<compile_context>
chip_gen: v5e
topology: v5e:2x2
jax: 0.10.0
libtpu: 0.0.40
codegen_flags: <defaults>
</compile_context>

<pallas_src>
import functools
import math

import jax
import jax.numpy as jnp
from jax.experimental import pallas as pl
from jax.experimental.pallas import tpu as pltpu


def _conv_sigmoid_gate(mean, w_ref, k_size):
    """sigmoid(Conv1d(1,1,k_size, padding=(k-1)//2, bias=False)) across channels.

    mean:  (1, C) float32, channels along lanes.
    w_ref: (k_size,) float32 SMEM ref holding the conv taps.
    """
    C = mean.shape[-1]
    pad = (k_size - 1) // 2
    lane = jax.lax.broadcasted_iota(jnp.int32, mean.shape, mean.ndim - 1)
    y = jnp.zeros_like(mean)
    for d in range(k_size):                      # k_size is static -> unrolled
        off = d - pad                            # out[c] += w[d] * mean[c + off]
        if off == 0:
            tap = mean
        else:
            tap = pltpu.roll(mean, shift=(-off) % C, axis=mean.ndim - 1)
            valid = jnp.logical_and(lane + off >= 0, lane + off < C)
            tap = jnp.where(valid, tap, 0.0)     # zero padding at the channel edges
        y = y + w_ref[d] * tap
    return 1.0 / (1.0 + jnp.exp(-y))             # EUP exp + reciprocal


def _eca_fused_kernel(x_ref, w_ref, o_ref, *, n_tokens, k_size):
    """Single pass: mean over N, channel-conv gate, scale.  Block = (1, N, C)."""
    x = x_ref[...].astype(jnp.float32)                       # (1, N, C)
    mean = jnp.sum(x, axis=1) * (1.0 / n_tokens)             # (1, C)
    gate = _conv_sigmoid_gate(mean, w_ref, k_size)           # (1, C)
    o_ref[...] = (x * gate[:, None, :]).astype(o_ref.dtype)


def _eca_mean_gate_kernel(x_ref, w_ref, gate_ref, acc_ref, *, n_tokens, block_n, k_size):
    """Pass 1 of the tiled path: accumulate channel sums over N tiles, finalize gate."""
    j = pl.program_id(1)

    @pl.when(j == 0)
    def _():
        acc_ref[...] = jnp.zeros_like(acc_ref)

    x = x_ref[...].astype(jnp.float32)                       # (1, bn, C)
    if n_tokens % block_n != 0:
        # Mask padded rows of the (possibly partial) last tile instead of asserting.
        row = jax.lax.broadcasted_iota(jnp.int32, x.shape, 1)
        x = jnp.where(row + j * block_n < n_tokens, x, 0.0)
    acc_ref[...] += jnp.sum(x, axis=1)                       # (1, C)

    @pl.when(j == pl.num_programs(1) - 1)
    def _():
        mean = acc_ref[...] * (1.0 / n_tokens)
        gate = _conv_sigmoid_gate(mean, w_ref, k_size)
        gate_ref[...] = gate[:, None, :].astype(gate_ref.dtype)


def _eca_scale_kernel(x_ref, gate_ref, o_ref):
    """Pass 2 of the tiled path: out = x * gate (gate broadcasts over the token axis)."""
    o_ref[...] = (x_ref[...] * gate_ref[...]).astype(o_ref.dtype)


@functools.partial(jax.jit, static_argnames=("k_size", "block_n", "vmem_budget_bytes"))
def eca_layer_1d_forward(x, conv_w, *, k_size=3, block_n=512,
                         vmem_budget_bytes=8 * 1024 * 1024):
    """Pallas forward of eca_layer_1d.

    x:      (B, N, C)  features, channels last (same layout the torch module consumes)
    conv_w: (1, 1, k_size) or (k_size,)  Conv1d weight (no bias)
    """
    B, N, C = x.shape
    w = conv_w.reshape(-1).astype(jnp.float32)               # (k_size,)
    w_spec = pl.BlockSpec(memory_space=pltpu.MemorySpace.SMEM)

    # ---- fused single-pass path: per-batch (N, C) slab resident in VMEM -------------
    slab_bytes = N * C * x.dtype.itemsize
    if 4 * slab_bytes <= vmem_budget_bytes:                  # in + out, double buffered
        return pl.pallas_call(
            functools.partial(_eca_fused_kernel, n_tokens=N, k_size=k_size),
            out_shape=jax.ShapeDtypeStruct((B, N, C), x.dtype),
            grid_spec=pltpu.PrefetchScalarGridSpec(
                num_scalar_prefetch=0,
                grid=(B,),
                in_specs=[
                    pl.BlockSpec((1, N, C), lambda b: (b, 0, 0)),
                    w_spec,
                ],
                out_specs=pl.BlockSpec((1, N, C), lambda b: (b, 0, 0)),
            ),
            compiler_params=pltpu.CompilerParams(
                dimension_semantics=("parallel",),           # shards batch over v7x TCs
                vmem_limit_bytes=32 * 1024 * 1024,
            ),
        )(x, w)

    # ---- tiled two-pass path for large N * C -----------------------------------------
    bn = min(block_n, N)
    n_blocks = pl.cdiv(N, bn)

    gate = pl.pallas_call(
        functools.partial(_eca_mean_gate_kernel, n_tokens=N, block_n=bn, k_size=k_size),
        out_shape=jax.ShapeDtypeStruct((B, 1, C), jnp.float32),
        grid_spec=pltpu.PrefetchScalarGridSpec(
            num_scalar_prefetch=0,
            grid=(B, n_blocks),
            in_specs=[
                pl.BlockSpec((1, bn, C), lambda b, j: (b, j, 0)),
                w_spec,
            ],
            out_specs=pl.BlockSpec((1, 1, C), lambda b, j: (b, 0, 0)),
            scratch_shapes=[pltpu.VMEM((1, C), jnp.float32)],
        ),
        compiler_params=pltpu.CompilerParams(
            dimension_semantics=("parallel", "arbitrary"),   # reduction axis last
            vmem_limit_bytes=32 * 1024 * 1024,
        ),
    )(x, w)

    return pl.pallas_call(
        _eca_scale_kernel,
        out_shape=jax.ShapeDtypeStruct((B, N, C), x.dtype),
        grid_spec=pltpu.PrefetchScalarGridSpec(
            num_scalar_prefetch=0,
            grid=(B, n_blocks),
            in_specs=[
                pl.BlockSpec((1, bn, C), lambda b, j: (b, j, 0)),
                pl.BlockSpec((1, 1, C), lambda b, j: (b, 0, 0)),
            ],
            out_specs=pl.BlockSpec((1, bn, C), lambda b, j: (b, j, 0)),
        ),
        compiler_params=pltpu.CompilerParams(
            dimension_semantics=("parallel", "parallel"),
            vmem_limit_bytes=32 * 1024 * 1024,
        ),
    )(x, gate)


if __name__ == "__main__":
    # Small but lane-friendly shapes: channel (last dim) is a multiple of 128.
    B, N, C = 2, 256, 128
    k_size = 3
    dtype = jnp.float32

    key = jax.random.PRNGKey(0)
    kx, kw, kx2 = jax.random.split(key, 3)
    x = jax.random.normal(kx, (B, N, C), dtype)
    bound = 1.0 / math.sqrt(1 * k_size)                      # torch Conv1d default init scale
    conv_w = jax.random.uniform(kw, (1, 1, k_size), dtype, -bound, bound)

    def ref_forward(xx, ww):
        w = ww.reshape(-1)
        c = xx.shape[-1]
        pad = (k_size - 1) // 2
        m = jnp.mean(xx, axis=1)                             # (B, C)
        mp = jnp.pad(m, ((0, 0), (pad, pad)))
        y = sum(w[d] * mp[:, d:d + c] for d in range(k_size))
        return xx * jax.nn.sigmoid(y)[:, None, :]

    want = ref_forward(x, conv_w)

    # 1) Fused single-pass kernel.
    out = eca_layer_1d_forward(x, conv_w, k_size=k_size)
    jax.block_until_ready(out)
    assert out.shape == (B, N, C)
    assert jnp.allclose(out, want, atol=1e-5, rtol=1e-5)

    # 2) Tiled two-pass path (forced via a tiny VMEM budget).
    out_tiled = eca_layer_1d_forward(x, conv_w, k_size=k_size, block_n=128,
                                     vmem_budget_bytes=0)
    jax.block_until_ready(out_tiled)
    assert jnp.allclose(out_tiled, want, atol=1e-5, rtol=1e-5)

    # 3) Tiled path with ragged N (not a multiple of the row tile) -> in-kernel masking.
    N2 = 200
    x2 = jax.random.normal(kx2, (B, N2, C), dtype)
    want2 = ref_forward(x2, conv_w)
    out2 = eca_layer_1d_forward(x2, conv_w, k_size=k_size, block_n=128,
                                vmem_budget_bytes=0)
    jax.block_until_ready(out2)
    assert jnp.allclose(out2, want2, atol=1e-5, rtol=1e-5)

    print("KERNEL_OK")
</pallas_src>

<mosaic_0001>
module attributes {stable_mosaic.version = 11 : i64} {
  func.func @_eca_fused_kernel(%arg0: i32, %arg1: memref<1x256x128xf32, #tpu.memory_space<vmem>>, %arg2: memref<3xf32, #tpu.memory_space<smem>>, %arg3: memref<1x256x128xf32, #tpu.memory_space<vmem>>) attributes {dimension_semantics = [#tpu.dimension_semantics<parallel>], iteration_bounds = array<i64: 2>, scalar_prefetch = 0 : i64, scratch_operands = 0 : i64, tpu.core_type = #tpu.core_type<tc>, window_params = [{transform_indices = @transform_0, window_bounds = array<i64: 1, 256, 128>}, {transform_indices = @transform_1, window_bounds = array<i64: 3>}, {transform_indices = @transform_2, window_bounds = array<i64: 1, 256, 128>}]} {
    %c0 = arith.constant 0 : index
    %c0_0 = arith.constant 0 : index
    %c0_1 = arith.constant 0 : index
    %0 = vector.load %arg1[%c0, %c0_0, %c0_1] : memref<1x256x128xf32, #tpu.memory_space<vmem>>, vector<1x256x128xf32>
    %cst = arith.constant dense<0.000000e+00> : vector<1x128xf32>
    %1 = vector.multi_reduction <add>, %0, %cst [1] : vector<1x256x128xf32> to vector<1x128xf32>
    %cst_2 = arith.constant 3.906250e-03 : f32
    %2 = vector.broadcast %cst_2 : f32 to vector<1x128xf32>
    %3 = arith.mulf %1, %2 : vector<1x128xf32>
    %4 = tpu.iota {dimensions = array<i32: 1>} : vector<1x128xi32>
    %cst_3 = arith.constant 0.000000e+00 : f32
    %5 = vector.broadcast %cst_3 : f32 to vector<1x128xf32>
    %c1_i32 = arith.constant 1 : i32
    %6 = tpu.dynamic_rotate %3 by %c1_i32 dim 1 : vector<1x128xf32>, i32 -> vector<1x128xf32>
    %c-1_i32 = arith.constant -1 : i32
    %7 = vector.broadcast %c-1_i32 : i32 to vector<1x128xi32>
    %8 = arith.addi %4, %7 : vector<1x128xi32>
    %c0_i32 = arith.constant 0 : i32
    %9 = vector.broadcast %c0_i32 : i32 to vector<1x128xi32>
    %10 = arith.cmpi sge, %8, %9 : vector<1x128xi32>
    %c-1_i32_4 = arith.constant -1 : i32
    %11 = vector.broadcast %c-1_i32_4 : i32 to vector<1x128xi32>
    %12 = arith.addi %4, %11 : vector<1x128xi32>
    %c128_i32 = arith.constant 128 : i32
    %13 = vector.broadcast %c128_i32 : i32 to vector<1x128xi32>
    %14 = arith.cmpi slt, %12, %13 : vector<1x128xi32>
    %15 = arith.andi %10, %14 : vector<1x128xi1>
    %cst_5 = arith.constant 0.000000e+00 : f32
    %16 = vector.broadcast %cst_5 : f32 to vector<1x128xf32>
    %17 = arith.select %15, %6, %16 : vector<1x128xi1>, vector<1x128xf32>
    %c0_6 = arith.constant 0 : index
    %18 = memref.load %arg2[%c0_6] : memref<3xf32, #tpu.memory_space<smem>>
    %19 = vector.broadcast %18 : f32 to vector<1x128xf32>
    %20 = arith.mulf %19, %17 : vector<1x128xf32>
    %21 = arith.addf %5, %20 : vector<1x128xf32>
    %c1 = arith.constant 1 : index
    %22 = memref.load %arg2[%c1] : memref<3xf32, #tpu.memory_space<smem>>
    %23 = vector.broadcast %22 : f32 to vector<1x128xf32>
    %24 = arith.mulf %23, %3 : vector<1x128xf32>
    %25 = arith.addf %21, %24 : vector<1x128xf32>
    %c127_i32 = arith.constant 127 : i32
    %26 = tpu.dynamic_rotate %3 by %c127_i32 dim 1 : vector<1x128xf32>, i32 -> vector<1x128xf32>
    %c1_i32_7 = arith.constant 1 : i32
    %27 = vector.broadcast %c1_i32_7 : i32 to vector<1x128xi32>
    %28 = arith.addi %4, %27 : vector<1x128xi32>
    %c0_i32_8 = arith.constant 0 : i32
    %29 = vector.broadcast %c0_i32_8 : i32 to vector<1x128xi32>
    %30 = arith.cmpi sge, %28, %29 : vector<1x128xi32>
    %c1_i32_9 = arith.constant 1 : i32
    %31 = vector.broadcast %c1_i32_9 : i32 to vector<1x128xi32>
    %32 = arith.addi %4, %31 : vector<1x128xi32>
    %c128_i32_10 = arith.constant 128 : i32
    %33 = vector.broadcast %c128_i32_10 : i32 to vector<1x128xi32>
    %34 = arith.cmpi slt, %32, %33 : vector<1x128xi32>
    %35 = arith.andi %30, %34 : vector<1x128xi1>
    %cst_11 = arith.constant 0.000000e+00 : f32
    %36 = vector.broadcast %cst_11 : f32 to vector<1x128xf32>
    %37 = arith.select %35, %26, %36 : vector<1x128xi1>, vector<1x128xf32>
    %c2 = arith.constant 2 : index
    %38 = memref.load %arg2[%c2] : memref<3xf32, #tpu.memory_space<smem>>
    %39 = vector.broadcast %38 : f32 to vector<1x128xf32>
    %40 = arith.mulf %39, %37 : vector<1x128xf32>
    %41 = arith.addf %25, %40 : vector<1x128xf32>
    %cst_12 = arith.constant 0.000000e+00 : f32
    %42 = vector.broadcast %cst_12 : f32 to vector<1x128xf32>
    %43 = arith.subf %42, %41 : vector<1x128xf32>
    %44 = math.exp %43 : vector<1x128xf32>
    %cst_13 = arith.constant 1.000000e+00 : f32
    %45 = vector.broadcast %cst_13 : f32 to vector<1x128xf32>
    %46 = arith.addf %45, %44 : vector<1x128xf32>
    %cst_14 = arith.constant 1.000000e+00 : f32
    %47 = vector.broadcast %cst_14 : f32 to vector<1x128xf32>
    %48 = arith.divf %47, %46 : vector<1x128xf32>
    %49 = vector.shape_cast %48 : vector<1x128xf32> to vector<1x1x128xf32>
    %50 = vector.broadcast %49 : vector<1x1x128xf32> to vector<1x256x128xf32>
    %51 = arith.mulf %0, %50 : vector<1x256x128xf32>
    %c0_15 = arith.constant 0 : index
    %c0_16 = arith.constant 0 : index
    %c0_17 = arith.constant 0 : index
    %52 = vector.load %arg3[%c0_15, %c0_16, %c0_17] : memref<1x256x128xf32, #tpu.memory_space<vmem>>, vector<1x256x128xf32>
    tpu.vector_store %arg3[%c0_15, %c0_16, %c0_17], %51 {strides = array<i32>} : memref<1x256x128xf32, #tpu.memory_space<vmem>>, vector<1x256x128xf32>,
    return
  }
  func.func @transform_0(%arg0: i32) -> (i32, i32, i32) {
    %c0_i32 = arith.constant 0 : i32
    %c0_i32_0 = arith.constant 0 : i32
    %c0_i32_1 = arith.constant 0 : i32
    return %arg0, %c0_i32, %c0_i32_0 : i32, i32, i32
  }
  func.func @transform_1(%arg0: i32) -> i32 {
    %c0_i32 = arith.constant 0 : i32
    %c0_i32_0 = arith.constant 0 : i32
    return %c0_i32 : i32
  }
  func.func @transform_2(%arg0: i32) -> (i32, i32, i32) {
    %c0_i32 = arith.constant 0 : i32
    %c0_i32_0 = arith.constant 0 : i32
    %c0_i32_1 = arith.constant 0 : i32
    return %arg0, %c0_i32, %c0_i32_0 : i32, i32, i32
  }
}

</mosaic_0001>

<bundles_post_ra>
// kernel: eca_layer_1d_forward.1
= control target key start
LH: loop header
LB: loop body
LE: loop exit
PB: predicated region body
PF: predicated region fallthrough
CT: control target
= control target key end

     0   :  { %7 = vsyncpa [#allocation3], 0  ;;  %s1064_s0 = inlined_call_operand.hbm [shape: f32[2,256,128], index: 0, kind: input, shape index: {}]   ;;  %s1065_s1 = inlined_call_operand.vmem [shape: f32[3], index: 1, kind: input, shape index: {}]   ;;  %s1066_s2 = inlined_call_operand.hbm [shape: f32[2,256,128], index: 2, kind: output, shape index: {}]  }
   0x1   :  { %9 = vsyncpa [#allocation3 + $0x1], 0 }
   0x2   :  { %10 = vsyncpa [#allocation5], 0 }
   0x3   :  { %11 = vsyncpa [#allocation4], 0 }
   0x4   :  { %13 = vsyncpa [#allocation4 + $0x1], 0  ;;  %s687_s9 = smov 0   ;;  %s689_s10 = smov 0  }
   0x5   :  { %s691_s11 = smov 0   ;;  %s693_s12 = smov 0  }
   0x6 LB: > { %s708_s13 = sadd.s32 4294967295, %s663_s12   ;;  %s461_s14 = sadd.s32 4294967294, %s663_s12   ;;  %s663_s12 = sphi %s693_s12, %s1077_s12   ;;  %s659_s11 = sphi %s691_s11, %s1076_s11   ;;  %s655_s10 = sphi %s689_s10, %s1075_s10   ;;  %s651_s9 = sphi %s687_s9, %s1074_s9  }
   0x7   : > { %s712_s15 = sadd.s32 1, %s663_s12   ;;  %s26_s16 = sadd.s32 1, %s659_s11 }
   0x8   : > { %s23_s17 = ssub.s32 %s663_s12, %s712_s15  ;;  %p33_p0 = scmp.ne.s32.totalorder %s659_s11, %s655_s10 }
   0x9   : > { %p24_p1 = scmp.eq.s32.totalorder %s23_s17, 0  ;;  %p34_p2 = scmp.eq.s32.totalorder %s663_s12, 0 }
   0xa   : > { %p39_p3 = scmp.ne.s32.totalorder %s655_s10, %s651_s9  ;;  %p40_p4 = scmp.eq.s32.totalorder %s708_s13, 0 }
   0xb   : > { %s724_s18 = scalar_select %p24_p1, %s659_s11, %s26_s16  }
   0xc   : > { %p726_p5 = por %p34_p2, %p33_p0  ;;  %p732_p6 = por %p40_p4, %p39_p3 }
   0xd   : > { %p84_p7 = scmp.eq.s32.totalorder %s708_s13, 1  ;;  %p90_p8 = scmp.eq.s32.totalorder %s461_s14, 1 }
   0xe   : > { %p462_p9 = scmp.ge.s32.totalorder %s663_s12, 1  ;;  %p97_p10 = scmp.lt.s32.totalorder %s663_s12, 3 }
   0xf   : > { %p739_p11 = por %p84_p7, %p33_p0  ;;  %p743_p12 = por %p90_p8, %p39_p3 }
  0x10   : > { %p747_p13 = pnand %p462_p9, %p97_p10  ;;  %s109_s26 = sshll.u32 %s1065_s1, 4  ;;  %s110_s26 = int_to_ptr.vmem [resolvable:$true] %s109_s26 }
  0x11   : > { %p502_p2 = scmp.lt.s32.totalorder %s663_s12, 2  ;;  %s120_s27 = sand.u32 1, %s659_s11  }
  0x12   : > { %p489_p1 = pneg %p747_p13  ;;  %s465_s29 = sshll.u32 %s120_s27, 8 }
  0x13   : > { %p763_p3 = pnand %p502_p2, %p726_p5  ;;  %s665_s30 = smov [#allocation6]  }
  0x14   : > { %p490_p7 = pnand %p489_p1, %p40_p4  ;;  %s479_s3 = sshll.u32 %s663_s12, 8 }
  0x15   : > { %s124_s4 = scalar_lea.vmem [#allocation2], %s465_s29  ;;  %s129_s8 = scalar_lea.hbm %s1064_s0, %s479_s3 }
  0x16   : > { %492 = dma.vmem_to_smem (!%p490_p7), %s110_s26, 16, %s665_s30, [#allocation5]  }
  0x17   : > { %s132_s5 = sshll.u32 %s124_s4, 4  ;;  %s130_s14 = sshll.u32 %s129_s8, 4  ;;  %s133_s5 = int_to_ptr.vmem [resolvable:$true] %s132_s5  ;;  %s131_s14 = int_to_ptr.hbm [resolvable:$true] %s130_s14 }
  0x18   : > { %s121_s16 = scalar_lea.sflag [#allocation3], %s120_s27  ;;  %s563_s17 = sshra.s32 %s131_s14, 4  ;;  %s564_s17 = int_to_ptr.hbm [resolvable:$true] %s563_s17 }
  0x19   : > { %s565_s19 = scalar_lea.hbm %s564_s17, 256  ;;  %p567_p8 = pneg %p763_p3 }
  0x1a   : > { %p566_p5 = scmp.ne.s32.totalorder %s564_s17, %s565_s19  ;;  %s570_s26 = scalar_lea.hbm %s1064_s0, 512 }
  0x1b   : > { %p571_p1 = scmp.lt.s32.totalorder %s564_s17, %s1064_s0  ;;  %p572_p2 = scmp.lt.s32.totalorder %s570_s26, %s565_s19 }
  0x1c   : > { %p568_p9 = pnand %p567_p8, %p566_p5 }
  0x1d   : > { %p573_p7 = por %p572_p2, %p571_p1 }
  0x1e   : > { %p569_p10 = pneg %p568_p9 }
  0x20   : > { %p574_p0 = pnand %p573_p7, %p569_p10 }
  0x22   : > { %577 = shalt.err (!%p574_p0)
}
  0x23   : > { %s666_s27 = smov 128   ;;  %s667_s3 = smov 8  }
  0x24   : > { %496 = dma.hbm_to_vmem [thread:$0]  (!%p763_p3), %s131_s14, 4096, %s133_s5, %s121_s16, %s666_s27, %s666_s27, %s667_s3  }
  0x25   : > { %144 = sbr.rel (%p747_p13) target bundleno = 321 (0x141), region = 28  ;;  %s784_s4 = sand.u32 (!%p747_p13), 1, %s655_s10  }
  0x26   : > { %s469_s6 = sshll.u32 (!%p747_p13), %s784_s4, 8  ;;  %s147_s7 = scalar_lea.sflag (!%p747_p13), [#allocation3], %s784_s4 }
  0x27   : > { %s790_s8 = scalar_lea.vmem (!%p747_p13), [#allocation2], %s469_s6 }
  0x2a   : > { %638 = dma.done.wait (%p732_p6), %s147_s7, 4096  }
  0x2b   : > { %640 = vsyncadd (%p732_p6), %s147_s7, 4294963200 }
  0x2c   : > { %642 = dma.done.wait (%p40_p4), [#allocation5], 16  }
  0x2d   : > { %644 = vsyncadd (%p40_p4), [#allocation5], 4294967280 }
  0x2e   : > { %161 = sfence }
  0x2f   : > { %v801_v0 = vld [vmem:[%s790_s8] sm:$0xff]  ;;  %v804_v1 = vld [vmem:[%s790_s8 + $0x8] sm:$0xff]  ;;  %v807_v2 = vld [vmem:[%s790_s8 + $0x10] sm:$0xff]  ;;  %s668_s20 = smov 1   ;;  %s669_s23 = smov 127  }
  0x30   : > { %v210_v3 = vadd.f32 %v804_v1, %v801_v0  ;;  %v812_v4 = vld [vmem:[%s790_s8 + $0x18] sm:$0xff]  ;;  %v816_v6 = vld [vmem:[%s790_s8 + $0x20] sm:$0xff]  ;;  %v820_v8 = vld [vmem:[%s790_s8 + $0x28] sm:$0xff]  ;;  %s257_s28 = sld [smem:[#allocation6]]  ;;  %s942_s16 = scalar_lea.vmem [#allocation7], %s469_s6 }
  0x31   : > { %v824_v10 = vld [vmem:[%s790_s8 + $0x30] sm:$0xff]  ;;  %v828_v12 = vld [vmem:[%s790_s8 + $0x38] sm:$0xff]  ;;  %v832_v14 = vld [vmem:[%s790_s8 + $0x40] sm:$0xff]  ;;  %s472_s5 = sld [smem:[#allocation6 + $0x1]]  ;;  %s480_s17 = sshll.u32 %s708_s13, 8 }
  0x32   : > { %v211_v5 = vadd.f32 %v210_v3, %v807_v2  ;;  %v836_v16 = vld [vmem:[%s790_s8 + $0x48] sm:$0xff]  ;;  %v840_v18 = vld [vmem:[%s790_s8 + $0x50] sm:$0xff]  ;;  %v844_v20 = vld [vmem:[%s790_s8 + $0x58] sm:$0xff]  ;;  %s473_s14 = sld [smem:[#allocation6 + $0x2]]  ;;  %s372_s25 = scalar_lea.hbm %s1066_s2, %s480_s17 }
  0x33   : > { %v848_v22 = vld [vmem:[%s790_s8 + $0x60] sm:$0xff]  ;;  %v852_v24 = vld [vmem:[%s790_s8 + $0x68] sm:$0xff]  ;;  %v856_v26 = vld [vmem:[%s790_s8 + $0x70] sm:$0xff]  ;;  %s373_s13 = sshll.u32 %s942_s16, 4  ;;  %s375_s26 = sshll.u32 %s372_s25, 4  ;;  %s374_s13 = int_to_ptr.vmem [resolvable:$true] %s373_s13  ;;  %s376_s26 = int_to_ptr.hbm [resolvable:$true] %s375_s26 }
  0x34   : > { %v212_v7 = vadd.f32 %v211_v5, %v812_v4  ;;  %v860_v28 = vld [vmem:[%s790_s8 + $0x78] sm:$0xff]  ;;  %v864_v30 = vld [vmem:[%s790_s8 + $0x80] sm:$0xff]  ;;  %v868_v32 = vld [vmem:[%s790_s8 + $0x88] sm:$0xff]  ;;  %s361_s29 = scalar_lea.sflag [#allocation4], %s784_s4  ;;  %s607_s30 = sshra.s32 %s376_s26, 4  ;;  %s608_s30 = int_to_ptr.hbm [resolvable:$true] %s607_s30 }
  0x35   : > { %v872_v34 = vld [vmem:[%s790_s8 + $0x90] sm:$0xff]  ;;  %v876_v36 = vld [vmem:[%s790_s8 + $0x98] sm:$0xff]  ;;  %v880_v38 = vld [vmem:[%s790_s8 + $0xa0] sm:$0xff]  ;;  %s609_s27 = scalar_lea.hbm %s608_s30, 256  ;;  %s613_s7 = scalar_lea.hbm %s1066_s2, 512 }
  0x36   : > { %v213_v9 = vadd.f32 %v212_v7, %v816_v6  ;;  %v884_v40 = vld [vmem:[%s790_s8 + $0xa8] sm:$0xff]  ;;  %v888_v42 = vld [vmem:[%s790_s8 + $0xb0] sm:$0xff]  ;;  %v892_v44 = vld [vmem:[%s790_s8 + $0xb8] sm:$0xff]  ;;  %p610_p4 = scmp.ne.s32.totalorder %s608_s30, %s609_s27  ;;  %p614_p0 = scmp.lt.s32.totalorder %s608_s30, %s1066_s2 }
  0x37   : > { %v896_v46 = vld [vmem:[%s790_s8 + $0xc0] sm:$0xff]  ;;  %v900_v48 = vld [vmem:[%s790_s8 + $0xc8] sm:$0xff]  ;;  %v904_v50 = vld [vmem:[%s790_s8 + $0xd0] sm:$0xff]  ;;  %p615_p3 = scmp.lt.s32.totalorder %s613_s7, %s609_s27 }
  0x38   : > { %v214_v11 = vadd.f32 %v213_v9, %v820_v8  ;;  %v908_v52 = vld [vmem:[%s790_s8 + $0xd8] sm:$0xff]  ;;  %v912_v54 = vld [vmem:[%s790_s8 + $0xe0] sm:$0xff]  ;;  %v916_v56 = vld [vmem:[%s790_s8 + $0xe8] sm:$0xff]  ;;  %p611_p6 = pnand %p610_p4, %p739_p11 }
  0x39   : > { %v920_v58 = vld [vmem:[%s790_s8 + $0xf0] sm:$0xff]  ;;  %v924_v60 = vld [vmem:[%s790_s8 + $0xf8] sm:$0xff]  ;;  %p616_p5 = por %p615_p3, %p614_p0 }
  0x3a   : > { %v215_v13 = vadd.f32 %v214_v11, %v824_v10  ;;  %p612_p13 = pneg %p611_p6 }
  0x3c   : > { %v216_v15 = vadd.f32 %v215_v13, %v828_v12  ;;  %p617_p8 = pnand %p616_p5, %p612_p13 }
  0x3e   : > { %v217_v17 = vadd.f32 %v216_v15, %v832_v14  ;;  %v248_v15 = vlaneseq }
  0x40   : > { %v218_v19 = vadd.f32 %v217_v17, %v836_v16  ;;  %v249_v17 = vand.u32 127, %v248_v15 }
  0x42   : > { %v219_v21 = vadd.f32 %v218_v19, %v840_v18  ;;  %v252_v19 = vadd.s32 4294967295, %v249_v17 }
  0x44   : > { %v220_v23 = vadd.f32 %v219_v21, %v844_v20  ;;  %vm253_vm0 = vcmp.ge.s32.totalorder %v252_v19, 0 }
  0x46   : > { %v221_v25 = vadd.f32 %v220_v23, %v848_v22  ;;  %v267_v23 = vadd.s32 1, %v249_v17 }
  0x48   : > { %v222_v27 = vadd.f32 %v221_v25, %v852_v24  ;;  %v258_v25 = vstv %s257_s28  ;;  %vm269_vm1 = vcmp.lt.s32.totalorder %v267_v23, 128 }
  0x4a   : > { %v223_v29 = vadd.f32 %v222_v27, %v856_v26  ;;  %v262_v27 = vstv %s472_s5 }
  0x4c   : > { %v224_v31 = vadd.f32 %v223_v29, %v860_v28 }
  0x4e   : > { %v225_v33 = vadd.f32 %v224_v31, %v864_v30 }
  0x50   : > { %v226_v35 = vadd.f32 %v225_v33, %v868_v32 }
  0x52   : > { %v227_v37 = vadd.f32 %v226_v35, %v872_v34  ;;  %v273_v35 = vstv %s473_s14 }
  0x54   : > { %v228_v39 = vadd.f32 %v227_v37, %v876_v36 }
  0x56   : > { %v229_v41 = vadd.f32 %v228_v39, %v880_v38 }
  0x58   : > { %v230_v43 = vadd.f32 %v229_v41, %v884_v40 }
  0x5a   : > { %v231_v45 = vadd.f32 %v230_v43, %v888_v42 }
  0x5c   : > { %v232_v47 = vadd.f32 %v231_v45, %v892_v44 }
  0x5e   : > { %v233_v49 = vadd.f32 %v232_v47, %v896_v46 }
  0x60   : > { %v234_v51 = vadd.f32 %v233_v49, %v900_v48 }
  0x62   : > { %v235_v53 = vadd.f32 %v234_v51, %v904_v50 }
  0x64   : > { %v236_v55 = vadd.f32 %v235_v53, %v908_v52 }
  0x66   : > { %v237_v57 = vadd.f32 %v236_v55, %v912_v54 }
  0x68   : > { %v238_v59 = vadd.f32 %v237_v57, %v916_v56 }
  0x6a   : > { %v239_v61 = vadd.f32 %v238_v59, %v920_v58 }
  0x6c   : > { %v240_v62 = vadd.f32 %v239_v61, %v924_v60 }
  0x6e   : > { %v241_v63 = vrot.slane %v240_v62, 4 }
  0x70   : > { %v242_v3 = vadd.f32 %v241_v63, %v240_v62 }
  0x72   : > { %v243_v5 = vrot.slane %v242_v3, 2 }
  0x74   : > { %v244_v7 = vadd.f32 %v243_v5, %v242_v3 }
  0x76   : > { %v245_v9 = vrot.slane %v244_v7, 1 }
  0x78   : > { %v246_v11 = vadd.f32 %v245_v9, %v244_v7 }
  0x7a   : > { %v247_v13 = vmul.f32 0.00390625, %v246_v11 }
  0x7c   : > { %250 = vrot.lane.b32.xlu0 %v247_v13, %s668_s20  ;;  %v263_v33 = vmul.f32 %v262_v27, %v247_v13 }
  0x84   : > { %265 = vrot.lane.b32.xlu0 %v247_v13, %s669_s23 }
  0xee   : > { %v251_v21 = vpop.permute.xlu0 %250 }
  0xef   : > { %v256_v29 = vsel %vm253_vm0, %v251_v21, 0.0 }
  0xf0   : > { %v259_v31 = vmul.f32 %v258_v25, %v256_v29 }
  0xf2   : > { %v264_v41 = vadd.f32 %v263_v33, %v259_v31 }
  0xf6   : > { %v266_v37 = vpop.permute.xlu0 %265 }
  0xf7   : > { %v271_v39 = vsel %vm269_vm1, %v266_v37, 0.0 }
  0xf8   : > { %v274_v43 = vmul.f32 %v273_v35, %v271_v39 }
  0xfa   : > { %v275_v45 = vadd.f32 %v274_v43, %v264_v41 }
  0xfc   : > { %v276_v47 = vsub.f32 0.0, %v275_v45 }
  0xfe   : > { %v277_v49 = vmul.f32 1.442695, %v276_v47 }
 0x100   : > { %544 = vpow2.f32 %v277_v49 }
 0x106   : > { %v545_v51 = vpop.eup %544 }
 0x107   : > { %v279_v53 = vadd.f32 1.0, %v545_v51 }
 0x109   : > { %546 = vrcp.f32 %v279_v53  ;;  %v291_v61 = vand.u32 2147483648, %v279_v53  ;;  %v289_v63 = vand.u32 2147483647, %v279_v53  ;;  %vm285_vm3 = vweird.f32 %v279_v53 }
 0x10b   : > { %v292_v5 = vor.u32 1.1754944e-38, %v291_v61  ;;  %vm290_vm5 = vcmp.eq.f32.partialorder %v289_v63, 8.507059e+37 }
 0x10f   : > { %v547_v55 = vpop.eup %546 }
 0x110   : > { %v281_v57 = vmul.f32 %v547_v55, %v279_v53  ;;  %vm286_vm2 = vweird.f32 %v547_v55 }
 0x111   : > { %vm287_vm4 = vmor %vm285_vm3, %vm286_vm2 }
 0x112   : > { %v282_v59 = vsub.f32 1.0, %v281_v57 }
 0x114   : > { %v283_v62 = vmul.f32 %v547_v55, %v282_v59 }
 0x116   : > { %v284_v3 = vadd.f32 %v547_v55, %v283_v62 }
 0x118   : > { %v288_v7 = vsel %vm287_vm4, %v547_v55, %v284_v3 }
 0x119   : > { %v293_v9 = vsel %vm290_vm5, %v292_v5, %v288_v7 }
 0x11a   : > { %v928_v11 = vperm.slane %v293_v9, 0 }
 0x11c   : > { %v296_v13 = vmul.f32 %v928_v11, %v801_v0  ;;  %v297_v15 = vmul.f32 %v928_v11, %v804_v1  ;;  %v298_v17 = vmul.f32 %v928_v11, %v807_v2  ;;  %v299_v19 = vmul.f32 %v928_v11, %v812_v4 }
 0x11d   : > { %v300_v21 = vmul.f32 %v928_v11, %v816_v6  ;;  %v301_v0 = vmul.f32 %v928_v11, %v820_v8  ;;  %v302_v1 = vmul.f32 %v928_v11, %v824_v10  ;;  %v303_v2 = vmul.f32 %v928_v11, %v828_v12 }
 0x11e   : > { %328 = vst [vmem:[%s942_s16] sm:$0xff] %v296_v13  ;;  %v304_v4 = vmul.f32 %v928_v11, %v832_v14  ;;  %v305_v6 = vmul.f32 %v928_v11, %v836_v16  ;;  %v306_v8 = vmul.f32 %v928_v11, %v840_v18  ;;  %v307_v10 = vmul.f32 %v928_v11, %v844_v20 }
 0x11f   : > { %329 = vst [vmem:[%s942_s16 + $0x8] sm:$0xff] %v297_v15  ;;  %v308_v12 = vmul.f32 %v928_v11, %v848_v22  ;;  %v309_v14 = vmul.f32 %v928_v11, %v852_v24  ;;  %v310_v16 = vmul.f32 %v928_v11, %v856_v26  ;;  %v311_v18 = vmul.f32 %v928_v11, %v860_v28 }
 0x120   : > { %330 = vst [vmem:[%s942_s16 + $0x10] sm:$0xff] %v298_v17  ;;  %v312_v20 = vmul.f32 %v928_v11, %v864_v30  ;;  %v313_v22 = vmul.f32 %v928_v11, %v868_v32  ;;  %v314_v24 = vmul.f32 %v928_v11, %v872_v34  ;;  %v315_v26 = vmul.f32 %v928_v11, %v876_v36 }
 0x121   : > { %331 = vst [vmem:[%s942_s16 + $0x18] sm:$0xff] %v299_v19  ;;  %v316_v28 = vmul.f32 %v928_v11, %v880_v38  ;;  %v317_v30 = vmul.f32 %v928_v11, %v884_v40  ;;  %v318_v32 = vmul.f32 %v928_v11, %v888_v42  ;;  %v319_v34 = vmul.f32 %v928_v11, %v892_v44 }
 0x122   : > { %332 = vst [vmem:[%s942_s16 + $0x20] sm:$0xff] %v300_v21  ;;  %v320_v36 = vmul.f32 %v928_v11, %v896_v46  ;;  %v321_v38 = vmul.f32 %v928_v11, %v900_v48  ;;  %v322_v40 = vmul.f32 %v928_v11, %v904_v50  ;;  %v323_v42 = vmul.f32 %v928_v11, %v908_v52 }
 0x123   : > { %333 = vst [vmem:[%s942_s16 + $0x28] sm:$0xff] %v301_v0  ;;  %v324_v44 = vmul.f32 %v928_v11, %v912_v54  ;;  %v325_v46 = vmul.f32 %v928_v11, %v916_v56  ;;  %v326_v48 = vmul.f32 %v928_v11, %v920_v58  ;;  %v327_v50 = vmul.f32 %v928_v11, %v924_v60 }
 0x124   : > { %334 = vst [vmem:[%s942_s16 + $0x30] sm:$0xff] %v302_v1 }
 0x125   : > { %335 = vst [vmem:[%s942_s16 + $0x38] sm:$0xff] %v303_v2 }
 0x126   : > { %336 = vst [vmem:[%s942_s16 + $0x40] sm:$0xff] %v304_v4 }
 0x127   : > { %337 = vst [vmem:[%s942_s16 + $0x48] sm:$0xff] %v305_v6 }
 0x128   : > { %338 = vst [vmem:[%s942_s16 + $0x50] sm:$0xff] %v306_v8 }
 0x129   : > { %339 = vst [vmem:[%s942_s16 + $0x58] sm:$0xff] %v307_v10 }
 0x12a   : > { %340 = vst [vmem:[%s942_s16 + $0x60] sm:$0xff] %v308_v12 }
 0x12b   : > { %341 = vst [vmem:[%s942_s16 + $0x68] sm:$0xff] %v309_v14 }
 0x12c   : > { %342 = vst [vmem:[%s942_s16 + $0x70] sm:$0xff] %v310_v16 }
 0x12d   : > { %343 = vst [vmem:[%s942_s16 + $0x78] sm:$0xff] %v311_v18 }
 0x12e   : > { %344 = vst [vmem:[%s942_s16 + $0x80] sm:$0xff] %v312_v20 }
 0x12f   : > { %345 = vst [vmem:[%s942_s16 + $0x88] sm:$0xff] %v313_v22 }
 0x130   : > { %346 = vst [vmem:[%s942_s16 + $0x90] sm:$0xff] %v314_v24 }
 0x131   : > { %347 = vst [vmem:[%s942_s16 + $0x98] sm:$0xff] %v315_v26 }
 0x132   : > { %348 = vst [vmem:[%s942_s16 + $0xa0] sm:$0xff] %v316_v28 }
 0x133   : > { %349 = vst [vmem:[%s942_s16 + $0xa8] sm:$0xff] %v317_v30 }
 0x134   : > { %350 = vst [vmem:[%s942_s16 + $0xb0] sm:$0xff] %v318_v32 }
 0x135   : > { %351 = vst [vmem:[%s942_s16 + $0xb8] sm:$0xff] %v319_v34 }
 0x136   : > { %352 = vst [vmem:[%s942_s16 + $0xc0] sm:$0xff] %v320_v36 }
 0x137   : > { %353 = vst [vmem:[%s942_s16 + $0xc8] sm:$0xff] %v321_v38 }
 0x138   : > { %354 = vst [vmem:[%s942_s16 + $0xd0] sm:$0xff] %v322_v40 }
 0x139   : > { %355 = vst [vmem:[%s942_s16 + $0xd8] sm:$0xff] %v323_v42 }
 0x13a   : > { %356 = vst [vmem:[%s942_s16 + $0xe0] sm:$0xff] %v324_v44 }
 0x13b   : > { %357 = vst [vmem:[%s942_s16 + $0xe8] sm:$0xff] %v325_v46 }
 0x13c   : > { %358 = vst [vmem:[%s942_s16 + $0xf0] sm:$0xff] %v326_v48 }
 0x13d   : > { %359 = vst [vmem:[%s942_s16 + $0xf8] sm:$0xff] %v327_v50 }
 0x13e   : > { %620 = shalt.err (!%p617_p8)
}
 0x13f   : > { %s670_s4 = smov 128   ;;  %s671_s23 = smov 8  }
 0x140   : > { %487 = dma.vmem_to_hbm [thread:$0]  (%p739_p11), %s374_s13, 4096, %s376_s26, %s361_s29, %s670_s4, %s670_s4, %s671_s23  }
 0x141 PF: > { %s390_s28 = sand.u32 1, %s651_s9   ;;  %p1073_p9 = scmp.ge.s32.totalorder %s663_s12, 2 }
 0x142   : > { %s391_s5 = scalar_lea.sflag [#allocation4], %s390_s28 }
 0x143   : > { %p498_p10 = pnand %p1073_p9, %p743_p12 }
 0x145   : > { %p499_p1 = pneg %p498_p10 }
 0x147   : > { %646 = dma.done.wait (%p499_p1), %s391_s5, 4096  }
 0x148   : > { %648 = vsyncadd (%p499_p1), %s391_s5, 4294963200  ;;  %p16_p2 = scmp.ge.s32.totalorder %s712_s15, 4   ;;  %s1074_s9 = smov %s655_s10 }
 0x149   : > { %s1075_s10 = smov %s659_s11  ;;  %s1076_s11 = smov %s724_s18 }
 0x14a   : > { %s1077_s12 = smov %s712_s15  ;;  %18 = sbr.rel (!%p16_p2) target bundleno = 6 (0x6), region = 78 }
 0x14f   :  { %397 = vsyncpa [#allocation3], 1 }
 0x150   :  { %399 = vsyncpa [#allocation3 + $0x1], 1 }
 0x151   :  { %400 = vsyncpa [#allocation4], 1 }
 0x152   :  { %402 = vsyncpa [#allocation4 + $0x1], 1 }
 0x153   :  { %403 = vsyncpa [#allocation5], 1 }
 0x154   :  { %405 = vsyncpa [#allocation5 + $0x1], 1 }

</bundles_post_ra>
